<compile_context>
chip_gen: v5e
topology: v5e:2x2
jax: 0.10.0
libtpu: 0.0.40
codegen_flags: <defaults>
</compile_context>

<pallas_src>
import functools
import math

import jax
import jax.numpy as jnp
from jax.experimental import pallas as pl
from jax.experimental.pallas import tpu as pltpu


def _rup(n, m):
    return ((n + m - 1) // m) * m


def _pad2(a, rows, cols):
    return jnp.pad(a, ((0, rows - a.shape[0]), (0, cols - a.shape[1])))


def _vmem_limit_bytes():
    """Derive a VMEM budget from the actual chip; conservative fallback."""
    try:
        cap = int(pltpu.get_tpu_info().vmem_capacity_bytes)
    except Exception:
        cap = 64 * 1024 * 1024
    return int(max(min((cap * 3) // 4, 112 * 1024 * 1024), 32 * 1024 * 1024))


# ----------------------- fused scatter-aggregate + update ---------------------
def _scatter_update_kernel(tab_ref, nblk_ref, dst_ref, g_ref, lin_ref, out_ref,
                           *, ct):
    """Grid = (dest_tile i [parallel], pair_chunk k [reduction, arbitrary]).

    tab_ref : SMEM int32 [n_tiles*max_blk]  clamped chunk index per (i, k)
              (consumed by the index_maps; unused in the body)
    nblk_ref: SMEM int32 [n_tiles]          #pair-chunks owned by tile i
    dst_ref : [1, C]      int32  destination index of each pair in this chunk
    g_ref   : [C, F_p]    ct     pre-gathered source features for this chunk
    lin_ref : [tile, F_p] f32    dense-linear output for this destination tile
    out_ref : [tile, F_p] f32    accumulator + final result (resident over k)
    """
    del tab_ref
    i = pl.program_id(0)
    k = pl.program_id(1)
    tile = out_ref.shape[0]
    c = dst_ref.shape[1]

    @pl.when(k == 0)
    def _():
        out_ref[...] = jnp.zeros_like(out_ref)

    @pl.when(k < nblk_ref[i])
    def _():
        # One-hot scatter: scat[r, p] = 1 iff pair p lands on local row r.
        row_ids = i * tile + jax.lax.broadcasted_iota(jnp.int32, (tile, c), 0)
        scat = (row_ids == dst_ref[...]).astype(ct)              # [tile, C]
        out_ref[...] += jnp.dot(scat, g_ref[...],
                                preferred_element_type=jnp.float32)

    @pl.when(k == pl.num_programs(1) - 1)
    def _():
        lin = lin_ref[...]
        out_ref[...] = lin + out_ref[...] * lin                  # lin*(1+aggr)


def _segment_scatter_update(dst_sorted, g_sorted, lin_full, *, tile, chunk, ct,
                            vmem_limit):
    """out[r] = lin_full[r] * (1 + sum_{p: dst_sorted[p]==r} g_sorted[p]).

    dst_sorted must be sorted ascending; g_sorted is already permuted to match.
    Returns [n_dst_p, feat_p] f32 (padded rows hold lin-only values = 0 here).
    """
    n_dst_p, feat_p = lin_full.shape
    n_tiles = n_dst_p // tile
    n_pairs = dst_sorted.shape[0]

    e_pad = _rup(max(n_pairs, 1), chunk)
    n_chunks = e_pad // chunk

    # Row-layout padded indices (-1 sentinel never matches a row id >= 0) and
    # zero-padded, compute-dtype gathered features.
    dst_p = jnp.full((e_pad,), -1, jnp.int32)
    dst_p = dst_p.at[:n_pairs].set(dst_sorted.astype(jnp.int32))
    g_p = _pad2(g_sorted.astype(ct), e_pad, feat_p)

    # Per-tile pair ranges in the sorted order -> per-tile chunk ranges.
    tile_lo = jnp.arange(n_tiles, dtype=jnp.int32) * tile
    lo = jnp.searchsorted(dst_sorted.astype(jnp.int32), tile_lo,
                          side="left").astype(jnp.int32)
    hi = jnp.searchsorted(dst_sorted.astype(jnp.int32), tile_lo + tile,
                          side="left").astype(jnp.int32)
    start_blk = lo // chunk
    nblk = jnp.where(hi > lo, (hi - 1) // chunk - start_blk + 1, 0)
    nblk = nblk.astype(jnp.int32)
    max_blk = max(int(jnp.max(nblk)), 1)

    # Flattened (1-D, SMEM-friendly) clamped chunk-index table: tab[i*MB + k].
    tab = jnp.minimum(
        start_blk[:, None] + jnp.arange(max_blk, dtype=jnp.int32)[None, :],
        n_chunks - 1).reshape(-1).astype(jnp.int32)

    mb = max_blk
    out = pl.pallas_call(
        functools.partial(_scatter_update_kernel, ct=ct),
        out_shape=jax.ShapeDtypeStruct((n_dst_p, feat_p), jnp.float32),
        grid_spec=pltpu.PrefetchScalarGridSpec(
            num_scalar_prefetch=2,
            grid=(n_tiles, max_blk),
            in_specs=[
                # destination indices for this pair chunk (row layout)
                pl.BlockSpec((1, chunk), lambda i, k, t, n: (0, t[i * mb + k])),
                # pre-gathered source features for this pair chunk
                pl.BlockSpec((chunk, feat_p),
                             lambda i, k, t, n: (t[i * mb + k], 0)),
                # dense-linear output for this destination tile (i only)
                pl.BlockSpec((tile, feat_p), lambda i, k, t, n: (i, 0)),
            ],
            out_specs=pl.BlockSpec((tile, feat_p), lambda i, k, t, n: (i, 0)),
        ),
        compiler_params=pltpu.CompilerParams(
            dimension_semantics=("parallel", "arbitrary"),
            vmem_limit_bytes=vmem_limit),
    )(tab, nblk, dst_p[None, :], g_p, lin_full)
    return out


# ---------------------------------- wrapper -----------------------------------
def hyper_econv(x, w, h, params, *, compute_dtype=jnp.bfloat16,
                tile_v=256, tile_e=256, pair_chunk=4096):
    """Returns (w_new, x_new) in f32, matching HyperEConv.forward's ordering."""
    ct = compute_dtype
    f32 = jnp.float32
    n_v, _ = x.shape
    n_e, _ = w.shape
    out_x = params["wx_v"].shape[1]
    out_w = params["wx_e"].shape[1]
    vmem_limit = _vmem_limit_bytes()

    # Sublane packing: 8 rows for f32, 16 for bf16.
    sub = max(8, 32 // jnp.dtype(ct).itemsize)
    tm = _rup(min(tile_v, _rup(max(n_v, 1), sub)), sub)
    te = _rup(min(tile_e, _rup(max(n_e, 1), sub)), sub)
    out_x_p, out_w_p = _rup(out_x, 128), _rup(out_w, 128)
    n_v_p, n_e_p = _rup(n_v, tm), _rup(n_e, te)
    chunk = _rup(max(pair_chunk, 128), 128)

    h = h.astype(jnp.int32)
    h0, h1 = h[0], h[1]

    def lin(a, W, b):
        return jnp.dot(a.astype(ct), W.astype(ct),
                       preferred_element_type=f32) + b

    # ---- Phase 1 (MPToVertex): projections + pair gather hoisted to XLA ----
    x_lin = lin(x, params["wx_v"], params["bx_v"])                # [n_v, out_x]
    w_lin = lin(w, params["ww_v"], params["bw_v"])                # [n_e, out_x]
    order_v = jnp.argsort(h0)                                     # sort by dst vertex
    dst_v = h0[order_v]
    gat_v = jnp.take(w_lin, h1[order_v], axis=0)                  # [E, out_x]
    x_new_p = _segment_scatter_update(
        dst_v, gat_v, _pad2(x_lin, n_v_p, out_x_p),
        tile=tm, chunk=chunk, ct=ct, vmem_limit=vmem_limit)
    x_new = x_new_p[:n_v, :out_x]

    # ---- Phase 2 (MPToEdge) --------------------------------------------------
    x_lin2 = lin(x_new, params["wx_e"], params["bx_e"])           # [n_v, out_w]
    w_lin2 = lin(w, params["ww_e"], params["bw_e"])               # [n_e, out_w]
    order_e = jnp.argsort(h1)                                     # sort by dst edge
    dst_e = h1[order_e]
    gat_e = jnp.take(x_lin2, h0[order_e], axis=0)                 # [E, out_w]
    w_new_p = _segment_scatter_update(
        dst_e, gat_e, _pad2(w_lin2, n_e_p, out_w_p),
        tile=te, chunk=chunk, ct=ct, vmem_limit=vmem_limit)
    w_new = w_new_p[:n_e, :out_w]

    return w_new, x_new


# -------------------------------- init / reference ----------------------------
def init_params(key, in_x, in_w, out_x, out_w):
    """Deterministic init mimicking torch.nn.Linear.reset_parameters."""
    ks = jax.random.split(key, 8)

    def linear(kw, kb, fan_in, fan_out):
        bound = 1.0 / math.sqrt(fan_in)
        W = jax.random.uniform(kw, (fan_in, fan_out), jnp.float32, -bound, bound)
        b = jax.random.uniform(kb, (fan_out,), jnp.float32, -bound, bound)
        return W, b

    wx_v, bx_v = linear(ks[0], ks[1], in_x, out_x)    # MPToVertex.lin_x
    ww_v, bw_v = linear(ks[2], ks[3], in_w, out_x)    # MPToVertex.lin_w
    wx_e, bx_e = linear(ks[4], ks[5], out_x, out_w)   # MPToEdge.lin_x (on x_new)
    ww_e, bw_e = linear(ks[6], ks[7], in_w, out_w)    # MPToEdge.lin_w
    return dict(wx_v=wx_v, bx_v=bx_v, ww_v=ww_v, bw_v=bw_v,
                wx_e=wx_e, bx_e=bx_e, ww_e=ww_e, bw_e=bw_e)


def ref_forward(x, w, h, params, ct=jnp.float32):
    """Pure-JAX reference with the same cast points as the kernel path."""
    f32 = jnp.float32
    H = jnp.zeros((x.shape[0], w.shape[0]), f32).at[h[0], h[1]].add(1.0)
    H = H.astype(ct)

    def lin(a, W, b):
        return jnp.dot(a.astype(ct), W.astype(ct),
                       preferred_element_type=f32) + b

    x_lin = lin(x, params["wx_v"], params["bx_v"])
    w_lin = lin(w, params["ww_v"], params["bw_v"])
    aggr_v = jnp.dot(H, w_lin.astype(ct), preferred_element_type=f32)
    x_new = x_lin + aggr_v * x_lin
    x_lin2 = lin(x_new, params["wx_e"], params["bx_e"])
    w_lin2 = lin(w, params["ww_e"], params["bw_e"])
    aggr_e = jnp.dot(H.T, x_lin2.astype(ct), preferred_element_type=f32)
    w_new = w_lin2 + aggr_e * w_lin2
    return w_new, x_new


if __name__ == "__main__":
    key = jax.random.PRNGKey(0)
    k_x, k_w, k_h0, k_h1, k_p = jax.random.split(key, 5)

    # Small hypergraph: 48 vertices, 24 hyperedges, 200 incidence pairs.
    N_V, N_E, E = 48, 24, 200
    IN_X, IN_W, OUT_X, OUT_W = 8, 16, 32, 64

    x = jax.random.normal(k_x, (N_V, IN_X), jnp.float32)
    w = jax.random.normal(k_w, (N_E, IN_W), jnp.float32)
    h = jnp.stack([jax.random.randint(k_h0, (E,), 0, N_V),
                   jax.random.randint(k_h1, (E,), 0, N_E)]).astype(jnp.int32)

    params = init_params(k_p, IN_X, IN_W, OUT_X, OUT_W)

    # f32 path with small tiles + small pair chunks: multi-tile parallel axis
    # and multi-chunk reduction (exercises the sorted per-tile chunk ranges,
    # the clamped chunk table and the pl.when(k < nblk) guard).
    w_f32, x_f32 = hyper_econv(x, w, h, params, compute_dtype=jnp.float32,
                               tile_v=16, tile_e=16, pair_chunk=128)
    jax.block_until_ready((w_f32, x_f32))
    w_ref, x_ref = ref_forward(x, w, h, params, jnp.float32)
    assert w_f32.shape == (N_E, OUT_W) and x_f32.shape == (N_V, OUT_X)
    assert jnp.allclose(x_f32, x_ref, atol=1e-4, rtol=1e-4)
    assert jnp.allclose(w_f32, w_ref, atol=1e-4, rtol=1e-4)

    # Default production config (bf16 streaming, 256-aligned tiles, 4k chunks).
    w_bf, x_bf = hyper_econv(x, w, h, params)
    jax.block_until_ready((w_bf, x_bf))
    w_refb, x_refb = ref_forward(x, w, h, params, jnp.bfloat16)
    assert jnp.allclose(x_bf, x_refb, atol=3e-2, rtol=3e-2)
    assert jnp.allclose(w_bf, w_refb, atol=3e-2, rtol=3e-2)

    # bf16 with small tiles / chunks (multi-step reduction path).
    w_bf2, x_bf2 = hyper_econv(x, w, h, params, compute_dtype=jnp.bfloat16,
                               tile_v=16, tile_e=16, pair_chunk=128)
    jax.block_until_ready((w_bf2, x_bf2))
    assert jnp.allclose(x_bf2, x_refb, atol=3e-2, rtol=3e-2)
    assert jnp.allclose(w_bf2, w_refb, atol=3e-2, rtol=3e-2)

    print("KERNEL_OK")
</pallas_src>

<mosaic_0001>
module attributes {stable_mosaic.version = 11 : i64} {
  func.func @_scatter_update_kernel(%arg0: i32, %arg1: i32, %arg2: memref<6xi32, #tpu.memory_space<smem>>, %arg3: memref<3xi32, #tpu.memory_space<smem>>, %arg4: memref<1x128xi32, #tpu.memory_space<vmem>>, %arg5: memref<128x128xf32, #tpu.memory_space<vmem>>, %arg6: memref<16x128xf32, #tpu.memory_space<vmem>>, %arg7: memref<16x128xf32, #tpu.memory_space<vmem>>) attributes {dimension_semantics = [#tpu.dimension_semantics<parallel>, #tpu.dimension_semantics<arbitrary>], iteration_bounds = array<i64: 3, 2>, scalar_prefetch = 2 : i64, scratch_operands = 0 : i64, tpu.core_type = #tpu.core_type<tc>, window_params = [{transform_indices = @transform_0, window_bounds = array<i64: 1, 128>}, {transform_indices = @transform_1, window_bounds = array<i64: 128, 128>}, {transform_indices = @transform_2, window_bounds = array<i64: 16, 128>}, {transform_indices = @transform_3, window_bounds = array<i64: 16, 128>}]} {
    %c0_i32 = arith.constant 0 : i32
    %0 = arith.cmpi eq, %arg1, %c0_i32 : i32
    %1 = arith.extui %0 : i1 to i32
    %c0_i32_0 = arith.constant 0 : i32
    %2 = arith.cmpi ne, %1, %c0_i32_0 : i32
    scf.if %2 {
      %cst = arith.constant 0.000000e+00 : f32
      %11 = vector.broadcast %cst : f32 to vector<16x128xf32>
      %c0 = arith.constant 0 : index
      %c0_3 = arith.constant 0 : index
      %12 = vector.load %arg7[%c0, %c0_3] : memref<16x128xf32, #tpu.memory_space<vmem>>, vector<16x128xf32>
      tpu.vector_store %arg7[%c0, %c0_3], %11 {strides = array<i32>} : memref<16x128xf32, #tpu.memory_space<vmem>>, vector<16x128xf32>,
    } else {
    }
    %3 = arith.index_cast %arg0 : i32 to index
    %4 = memref.load %arg3[%3] : memref<3xi32, #tpu.memory_space<smem>>
    %5 = arith.cmpi slt, %arg1, %4 : i32
    %6 = arith.extui %5 : i1 to i32
    %c0_i32_1 = arith.constant 0 : i32
    %7 = arith.cmpi ne, %6, %c0_i32_1 : i32
    scf.if %7 {
      %c16_i32 = arith.constant 16 : i32
      %11 = arith.muli %arg0, %c16_i32 : i32
      %12 = tpu.iota {dimensions = array<i32: 0>} : vector<16x128xi32>
      %13 = vector.broadcast %11 : i32 to vector<16x128xi32>
      %14 = arith.addi %13, %12 : vector<16x128xi32>
      %c0 = arith.constant 0 : index
      %c0_3 = arith.constant 0 : index
      %15 = vector.load %arg4[%c0, %c0_3] : memref<1x128xi32, #tpu.memory_space<vmem>>, vector<1x128xi32>
      %16 = vector.broadcast %15 : vector<1x128xi32> to vector<16x128xi32>
      %17 = arith.cmpi eq, %14, %16 : vector<16x128xi32>
      %18 = arith.extui %17 : vector<16x128xi1> to vector<16x128xi32>
      %19 = arith.sitofp %18 : vector<16x128xi32> to vector<16x128xf32>
      %c0_4 = arith.constant 0 : index
      %c0_5 = arith.constant 0 : index
      %20 = vector.load %arg7[%c0_4, %c0_5] : memref<16x128xf32, #tpu.memory_space<vmem>>, vector<16x128xf32>
      %c0_6 = arith.constant 0 : index
      %c0_7 = arith.constant 0 : index
      %21 = vector.load %arg5[%c0_6, %c0_7] : memref<128x128xf32, #tpu.memory_space<vmem>>, vector<128x128xf32>
      %cst = arith.constant dense<0.000000e+00> : vector<16x128xf32>
      %22 = tpu.matmul %19, %21, %cst {dimension_numbers = #tpu.dot_dimension_numbers<[1], [0], [0], [1], [0, 0, 1, 1], [], []>} : vector<16x128xf32>, vector<128x128xf32>, vector<16x128xf32> -> vector<16x128xf32>
      %23 = arith.addf %20, %22 : vector<16x128xf32>
      %c0_8 = arith.constant 0 : index
      %c0_9 = arith.constant 0 : index
      %24 = vector.load %arg7[%c0_8, %c0_9] : memref<16x128xf32, #tpu.memory_space<vmem>>, vector<16x128xf32>
      tpu.vector_store %arg7[%c0_8, %c0_9], %23 {strides = array<i32>} : memref<16x128xf32, #tpu.memory_space<vmem>>, vector<16x128xf32>,
    } else {
    }
    %c1_i32 = arith.constant 1 : i32
    %8 = arith.cmpi eq, %arg1, %c1_i32 : i32
    %9 = arith.extui %8 : i1 to i32
    %c0_i32_2 = arith.constant 0 : i32
    %10 = arith.cmpi ne, %9, %c0_i32_2 : i32
    scf.if %10 {
      %c0 = arith.constant 0 : index
      %c0_3 = arith.constant 0 : index
      %11 = vector.load %arg6[%c0, %c0_3] : memref<16x128xf32, #tpu.memory_space<vmem>>, vector<16x128xf32>
      %c0_4 = arith.constant 0 : index
      %c0_5 = arith.constant 0 : index
      %12 = vector.load %arg7[%c0_4, %c0_5] : memref<16x128xf32, #tpu.memory_space<vmem>>, vector<16x128xf32>
      %13 = arith.mulf %12, %11 : vector<16x128xf32>
      %14 = arith.addf %11, %13 : vector<16x128xf32>
      %c0_6 = arith.constant 0 : index
      %c0_7 = arith.constant 0 : index
      %15 = vector.load %arg7[%c0_6, %c0_7] : memref<16x128xf32, #tpu.memory_space<vmem>>, vector<16x128xf32>
      tpu.vector_store %arg7[%c0_6, %c0_7], %14 {strides = array<i32>} : memref<16x128xf32, #tpu.memory_space<vmem>>, vector<16x128xf32>,
    } else {
    }
    return
  }
  func.func @transform_0(%arg0: i32, %arg1: i32, %arg2: memref<6xi32, #tpu.memory_space<smem>>, %arg3: memref<3xi32, #tpu.memory_space<smem>>) -> (i32, i32) {
    %c2_i32 = arith.constant 2 : i32
    %0 = arith.muli %arg0, %c2_i32 : i32
    %1 = arith.addi %0, %arg1 : i32
    %2 = arith.index_cast %1 : i32 to index
    %3 = memref.load %arg2[%2] : memref<6xi32, #tpu.memory_space<smem>>
    %c0_i32 = arith.constant 0 : i32
    %c0_i32_0 = arith.constant 0 : i32
    return %c0_i32, %3 : i32, i32
  }
  func.func @transform_1(%arg0: i32, %arg1: i32, %arg2: memref<6xi32, #tpu.memory_space<smem>>, %arg3: memref<3xi32, #tpu.memory_space<smem>>) -> (i32, i32) {
    %c2_i32 = arith.constant 2 : i32
    %0 = arith.muli %arg0, %c2_i32 : i32
    %1 = arith.addi %0, %arg1 : i32
    %2 = arith.index_cast %1 : i32 to index
    %3 = memref.load %arg2[%2] : memref<6xi32, #tpu.memory_space<smem>>
    %c0_i32 = arith.constant 0 : i32
    %c0_i32_0 = arith.constant 0 : i32
    return %3, %c0_i32 : i32, i32
  }
  func.func @transform_2(%arg0: i32, %arg1: i32, %arg2: memref<6xi32, #tpu.memory_space<smem>>, %arg3: memref<3xi32, #tpu.memory_space<smem>>) -> (i32, i32) {
    %c0_i32 = arith.constant 0 : i32
    %c0_i32_0 = arith.constant 0 : i32
    return %arg0, %c0_i32 : i32, i32
  }
  func.func @transform_3(%arg0: i32, %arg1: i32, %arg2: memref<6xi32, #tpu.memory_space<smem>>, %arg3: memref<3xi32, #tpu.memory_space<smem>>) -> (i32, i32) {
    %c0_i32 = arith.constant 0 : i32
    %c0_i32_0 = arith.constant 0 : i32
    return %arg0, %c0_i32 : i32, i32
  }
}

</mosaic_0001>

<bundles_post_ra>
// kernel: tpu_custom_call.1
= control target key start
LH: loop header
LB: loop body
LE: loop exit
PB: predicated region body
PF: predicated region fallthrough
CT: control target
= control target key end

     0   :  { %s1020_s24 = smov [#allocation3]   ;;  %s1021_s25 = smov [#allocation4]   ;;  %s1481_s0 = inlined_call_operand.hbm [shape: s32[6], index: 0, kind: input, shape index: {}]   ;;  %s1482_s2 = inlined_call_operand.hbm [shape: s32[1,256], index: 2, kind: input, shape index: {}]   ;;  %s1483_s3 = inlined_call_operand.hbm [shape: f32[256,128], index: 3, kind: input, shape index: {}]   ;;  %s1484_s4 = inlined_call_operand.hbm [shape: f32[48,128], index: 4, kind: input, shape index: {}]   ;;  %s1485_s5 = inlined_call_operand.hbm [shape: f32[48,128], index: 5, kind: output, shape index: {}]   ;;  %s1486_s1 = inlined_call_operand.hbm [shape: s32[3], index: 1, kind: input, shape index: {}]  }
   0x1   :  { %1498 = sst [smem:[#allocation29_spill]] %s1482_s2  ;;  %s11_s20 = sshll.u32 %s1481_s0, 4  ;;  %s12_s20 = int_to_ptr.hbm [resolvable:$true] %s11_s20 }
   0x2   :  { %1499 = sst [smem:[#allocation30_spill]] %s1483_s3  ;;  %s16_s23 = sshll.u32 %s1486_s1, 4  ;;  %s17_s23 = int_to_ptr.hbm [resolvable:$true] %s16_s23 }
   0x3   :  { %1500 = sst [smem:[#allocation31_spill]] %s1484_s4 }
   0x4   :  { %1501 = sst [smem:[#allocation32_spill]] %s1485_s5 }
   0x5   :  { %14 = dma.hbm_to_smem %s12_s20, 16, %s1020_s24, [#allocation2] }
   0x6   :  { %19 = dma.hbm_to_smem %s17_s23, 16, %s1021_s25, [#allocation2] }
   0x7   :  { %946 = dma.done.wait [#allocation2], 32 }
   0x8   :  { %947 = vsyncadd [#allocation2], 4294967264 }
   0x9   :  { %22 = sfence }
   0xa   :  { %23 = vsyncpa [#allocation6], 0 }
   0xb   :  { %25 = vsyncpa [#allocation6 + $0x1], 0 }
   0xc   :  { %26 = vsyncpa [#allocation9], 0 }
   0xd   :  { %28 = vsyncpa [#allocation9 + $0x1], 0 }
   0xe   :  { %29 = vsyncpa [#allocation7], 0 }
   0xf   :  { %31 = vsyncpa [#allocation7 + $0x1], 0  ;;  %s1064_s0 = smov 0   ;;  %s1066_s26 = smov 0  }
  0x10   :  { %s1068_s1 = smov 0   ;;  %s1070_s27 = smov 0  }
  0x11   :  { %s1072_s28 = smov 0   ;;  %s1074_s29 = smov 0  }
  0x12   :  { %s1076_s30 = smov 0   ;;  %s1078_s6 = smov 0  }
  0x13   :  { %s1080_s7 = smov 0   ;;  %s1082_s8 = smov 0  }
  0x14   :  { %s1084_s9 = smov 0   ;;  %s1086_s10 = smov 0  }
  0x15   :  { %s1088_s11 = smov 0   ;;  %s1090_s12 = smov 0  }
  0x16 LB: > { %1502 = sst [smem:[#allocation21_spill]] %s986_s29  ;;  %s46_s13 = sadd.s32 1, %s1010_s10  ;;  %s1018_s12 = sphi %s1090_s12, %s37_s12   ;;  %s1014_s11 = sphi %s1088_s11, %s1558_s11   ;;  %s1010_s10 = sphi %s1086_s10, %s1548_s10   ;;  %s1006_s9 = sphi %s1084_s9, %s1557_s9   ;;  %s1002_s8 = sphi %s1082_s8, %s1547_s8   ;;  %s998_s7 = sphi %s1080_s7, %s1556_s7   ;;  %s994_s6 = sphi %s1078_s6, %s1555_s6   ;;  %s990_s30 = sphi %s1076_s30, %s1554_s30   ;;  %s986_s29 = sphi %s1074_s29, %s1545_s29   ;;  %s982_s28 = sphi %s1072_s28, %s1553_s28   ;;  %s978_s27 = sphi %s1070_s27, %s1552_s27   ;;  %s974_s1 = sphi %s1068_s1, %s1551_s1   ;;  %s970_s26 = sphi %s1066_s26, %s1550_s26   ;;  %s966_s0 = sphi %s1064_s0, %s1549_s0  }
  0x17   : > { %1503 = sst [smem:[#allocation22_spill]] %s1002_s8  ;;  %s49_s14 = sadd.s32 1, %s1014_s11 }
  0x18   : > { %1504 = sst [smem:[#allocation23_spill]] %s1006_s9  ;;  %p47_p0 = scmp.ge.s32.totalorder %s46_s13, 2 }
  0x19   : > { %1505 = sst [smem:[#allocation24_spill]] %s1010_s10  ;;  %s545_s15 = sshll.u32 %s1014_s11, 1 }
  0x1a   : > { %s1138_s16 = sadd.s32 %s1010_s10, %s545_s15  ;;  %p70_p1 = scmp.eq.s32.totalorder %s1018_s12, 0 }
  0x1b   : > { %s1560_s13 = smov (%p47_p0, %s46_s13), 0  ;;  %s1562_s14 = smov (!%p47_p0, %s49_s14), %s1014_s11 }
  0x1c   : > { %1506 = sst [smem:[#allocation25_spill]] %s1560_s13  ;;  %s94_s18 = sadd.s32 1, %s986_s29 }
  0x1d   : > { %s1145_s17 = sld [smem:[#allocation3 + %s1138_s16]]  ;;  %p51_p2 = scmp.ge.s32.totalorder %s1562_s14, 3 }
  0x1e   : > { %s87_s19 = sld [smem:[#allocation3 + %s1138_s16]]  ;;  %p101_p3 = scmp.ne.s32.totalorder %s986_s29, %s982_s28 }
  0x1f   : > { %p107_p4 = scmp.ne.s32.totalorder %s982_s28, %s978_s27  ;;  %s1564_s14 = smov (%p51_p2, %s1562_s14), 0 }
  0x20   : > { %p1157_p5 = por %p101_p3, %p70_p1  ;;  %s546_s21 = sshll.u32 %s1564_s14, 1 }
  0x21   : > { %p1495_p6 = scmp.lt.s32.totalorder %s1018_s12, 6  ;;  %s57_s22 = sadd.s32 %s546_s21, %s1560_s13 }
  0x22   : > { %s203_s23 = sand.u32 1, %s1018_s12   ;;  %s90_s24 = sld [smem:[#allocation3 + %s57_s22]] }
  0x23   : > { %s205_s25 = sand.u32 1, %s986_s29   ;;  %p1170_p7 = pnand %p1495_p6, %p1157_p5 }
  0x24   : > { %s552_s10 = sshll.u32 %s205_s25, 7  ;;  %p559_p9 = scmp.ge.s32.totalorder %s1018_s12, 1 }
  0x25   : > { %s598_s5 = scalar_select %p1157_p5, [#allocation3], [#allocation13] }
  0x26   : > { %s599_s9 = scalar_select %p1157_p5, %s1138_s16, 0 }
  0x27   : > { %s207_s4 = scalar_lea.vmem [#allocation8], %s552_s10  ;;  %s1566_s5 = smov (!%p1495_p6, %s598_s5), [#allocation15] }
  0x28   : > { %s91_s8 = ssub.s32 %s87_s19, %s90_s24  ;;  %s1179_s21 = sshll.u32 %s207_s4, 4 }
  0x29   : > { %1509 = sst [smem:[#allocation26_spill]] %s1179_s21  ;;  %p92_p8 = scmp.eq.s32.totalorder %s91_s8, 0 }
  0x2a   : > { %s1568_s9 = smov (!%p1495_p6, %s599_s9), 0  ;;  %p248_p10 = scmp.lt.s32.totalorder %s1018_s12, 7 }
  0x2b   : > { %s1185_s13 = scalar_select %p92_p8, %s986_s29, %s94_s18  }
  0x2c   : > { %s210_s25 = sld [smem:[%s1566_s5 + %s1568_s9]]  ;;  %p1191_p11 = pnand %p559_p9, %p248_p10 }
  0x2d   : > { %1510 = sst [smem:[#allocation27_spill]] %s1185_s13  ;;  %s1199_s24 = sadd.s32 4294967295, %s1018_s12  }
  0x2e   : > { %s1512_s3 = sld [smem:[#allocation30_spill]]  ;;  %s62_s13 = sadd.s32 1, %s998_s7 }
  0x2f   : > { %s58_s18 = sld [smem:[#allocation3 + %s57_s22]]  ;;  %s1202_s29 = scalar_lea.sflag [#allocation9], %s203_s23 }
  0x30   : > { %p776_p13 = pneg %p1170_p7 }
  0x32   : > { %s576_s4 = sshll.u32 %s210_s25, 7 }
  0x34   : > { %s215_s8 = scalar_lea.hbm %s1512_s3, %s576_s4  ;;  %s779_s4 = scalar_lea.hbm %s1512_s3, 256 }
  0x35   : > { %s216_s21 = sshll.u32 %s215_s8, 4  ;;  %s217_s21 = int_to_ptr.hbm [resolvable:$true] %s216_s21 }
  0x36   : > { %s772_s2 = sshra.s32 %s217_s21, 4  ;;  %s773_s2 = int_to_ptr.hbm [resolvable:$true] %s772_s2 }
  0x37   : > { %s774_s5 = scalar_lea.hbm %s773_s2, 128  ;;  %p780_p3 = scmp.lt.s32.totalorder %s773_s2, %s1512_s3 }
  0x38   : > { %p775_p12 = scmp.ne.s32.totalorder %s773_s2, %s774_s5  ;;  %p781_p5 = scmp.lt.s32.totalorder %s779_s4, %s774_s5 }
  0x3a   : > { %p777_p0 = pnand %p776_p13, %p775_p12  ;;  %p782_p8 = por %p781_p5, %p780_p3 }
  0x3c   : > { %p778_p2 = pneg %p777_p0 }
  0x3e   : > { %p783_p9 = pnand %p782_p8, %p778_p2 }
  0x40   : > { %786 = shalt.err (!%p783_p9)
}
  0x41   : > { %s1493_s22 = smov 128   ;;  %s1513_s23 = sld [smem:[#allocation26_spill]] }
  0x42   : > { %s1494_s2 = smov 8   ;;  %p69_p10 = scmp.ne.s32.totalorder %s998_s7, %s994_s6 }
  0x43   : > { %p75_p12 = scmp.ne.s32.totalorder %s994_s6, %s990_s30  ;;  %p1496_p13 = scmp.eq.s32.totalorder %s1199_s24, 0 }
  0x44   : > { %p1228_p2 = por %p70_p1, %p69_p10  ;;  %s183_s15 = sand.u32 1, %s998_s7  }
  0x45   : > { %s59_s9 = ssub.s32 %s1145_s17, %s58_s18  ;;  %p1245_p5 = por %p107_p4, %p1496_p13 }
  0x46   : > { %p60_p3 = scmp.eq.s32.totalorder %s59_s9, 0  ;;  %s1570_s16 = smov (!%p1228_p2, %s1138_s16), 0 }
  0x47   : > { %s1514_s8 = int_to_ptr.vmem [resolvable:$true] %s1513_s23  ;;  %s1574_s16 = smov (!%p1495_p6, %s1570_s16), 0 }
  0x48   : > { %617 = dma.hbm_to_vmem [thread:$0]  (!%p1170_p7), %s217_s21, 2048, %s1514_s8, %s1202_s29, %s1493_s22, %s1493_s22, %s1494_s2  }
  0x49   : > { %p1236_p7 = por %p1496_p13, %p75_p12  ;;  %s186_s17 = scalar_lea.vmem [#allocation5], %s183_s15 }
  0x4a   : > { %s1250_s25 = scalar_select %p60_p3, %s998_s7, %s62_s13  }
  0x4b   : > { %s595_s4 = scalar_select %p1228_p2, [#allocation3], [#allocation12] }
  0x4c   : > { %1518 = sst [smem:[#allocation28_spill]] %s1250_s25  ;;  %s196_s27 = sshll.u32 %s186_s17, 4  ;;  %s197_s27 = int_to_ptr.vmem [resolvable:$true] %s196_s27 }
  0x4d   : > { %s1572_s4 = smov (!%p1495_p6, %s595_s4), [#allocation14]  ;;  %p1265_p4 = pnand %p1495_p6, %p1228_p2 }
  0x4e   : > { %s189_s13 = sld [smem:[%s1572_s4 + %s1574_s16]]  ;;  %s544_s10 = sadd.s32 4294967294, %s1018_s12  }
  0x4f   : > { %s117_s19 = ssub.s32 %s1014_s11, %s1564_s14  ;;  %s120_s23 = sadd.s32 1, %s974_s1 }
  0x50   : > { %s1520_s22 = sld [smem:[#allocation29_spill]]  ;;  %p1276_p8 = scmp.eq.s32.totalorder %s117_s19, 0 }
  0x51   : > { %s184_s17 = scalar_lea.sflag [#allocation6], %s183_s15  ;;  %p806_p2 = pneg %p1265_p4 }
  0x56   : > { %s192_s2 = scalar_lea.hbm %s1520_s22, %s189_s13  ;;  %s809_s13 = scalar_lea.hbm %s1520_s22, 2 }
  0x57   : > { %s194_s5 = sshll.u32 %s192_s2, 4  ;;  %s195_s5 = int_to_ptr.hbm [resolvable:$true] %s194_s5 }
  0x58   : > { %s802_s25 = sshra.s32 %s195_s5, 4  ;;  %s803_s25 = int_to_ptr.hbm [resolvable:$true] %s802_s25 }
  0x59   : > { %s804_s16 = scalar_lea.hbm %s803_s25, 1  ;;  %p810_p0 = scmp.lt.s32.totalorder %s803_s25, %s1520_s22 }
  0x5a   : > { %p805_p12 = scmp.ne.s32.totalorder %s803_s25, %s804_s16  ;;  %p811_p13 = scmp.lt.s32.totalorder %s809_s13, %s804_s16 }
  0x5c   : > { %p807_p3 = pnand %p806_p2, %p805_p12  ;;  %p812_p9 = por %p811_p13, %p810_p0 }
  0x5e   : > { %p808_p6 = pneg %p807_p3 }
  0x60   : > { %p813_p10 = pnand %p812_p9, %p808_p6 }
  0x62   : > { %816 = shalt.err (!%p813_p10)
}
  0x63   : > { %612 = dma.hbm_to_vmem [thread:$0]  (!%p1265_p4), %s195_s5, 16, %s197_s27, %s184_s17  }
  0x64   : > { %s1297_s2 = scalar_select %p1276_p8, %s974_s1, %s120_s23  }
  0x65   : > { %p1522_p6 = scmp.ne.s32.totalorder %s974_s1, %s970_s26  ;;  %p1524_p0 = scmp.eq.s32.totalorder %s1199_s24, 0 }
  0x66   : > { %p1525_p9 = scmp.ne.s32.totalorder %s970_s26, %s966_s0  ;;  %p1528_p4 = scmp.eq.s32.totalorder %s1199_s24, 5 }
  0x67   : > { %p1304_p13 = por %p1522_p6, %p70_p1  ;;  %p1527_p12 = pmov %p1522_p6 }
  0x68   : > { %p1313_p10 = por %p1525_p9, %p1524_p0  ;;  %p163_p8 = scmp.eq.s32.totalorder %s544_s10, 5 }
  0x69   : > { %p1322_p2 = por %p1528_p4, %p1527_p12  ;;  %s230_s27 = sand.u32 1, %s974_s1  }
  0x6a   : > { %s577_s18 = sshll.u32 %s1014_s11, 4  ;;  %p1530_p1 = pmov %p1525_p9 }
  0x6b   : > { %s556_s5 = sshll.u32 %s230_s27, 4  ;;  %s1532_s4 = sld [smem:[#allocation31_spill]] }
  0x6c   : > { %p1331_p3 = por %p163_p8, %p1530_p1  ;;  %s232_s19 = scalar_lea.vmem [#allocation10], %s556_s5 }
  0x6d   : > { %s240_s9 = sshll.u32 %s232_s19, 4  ;;  %p1533_p6 = scmp.lt.s32.totalorder %s1018_s12, 6  ;;  %s241_s9 = int_to_ptr.vmem [resolvable:$true] %s240_s9 }
  0x6e   : > { %s1534_s10 = smov 8   ;;  %s1535_s22 = smov 128  }
  0x6f   : > { %p618_p0 = pnand %p1533_p6, %p1304_p13  ;;  %252 = sbr.rel (%p1191_p11) target bundleno = 365 (0x16d), region = 32 }
  0x70   : > { %s254_s27 = sand.u32 (!%p1191_p11), 1, %s994_s6  }
  0x71   : > { %s237_s8 = scalar_lea.hbm %s1532_s4, %s577_s18  ;;  %s255_s17 = scalar_lea.sflag (!%p1191_p11), [#allocation6], %s254_s27 }
  0x72   : > { %s238_s13 = sshll.u32 %s237_s8, 4  ;;  %s1349_s18 = scalar_lea.vmem (!%p1191_p11), [#allocation5], %s254_s27  ;;  %s239_s13 = int_to_ptr.hbm [resolvable:$true] %s238_s13 }
  0x73   : > { %620 = dma.hbm_to_vmem [thread:$0]  (!%p618_p0), %s239_s13, 256, %s241_s9, %s1202_s29, %s1535_s22, %s1535_s22, %s1534_s10  }
  0x74   : > { %949 = dma.done.wait (%p1236_p7), %s255_s17, 16  }
  0x75   : > { %951 = vsyncadd (%p1236_p7), %s255_s17, 4294967280  ;;  %s263_s15 = sand.u32 1, %s1199_s24   ;;  %s265_s5 = sand.u32 1, %s982_s28  }
  0x76   : > { %s560_s29 = sshll.u32 %s265_s5, 7  ;;  %s264_s22 = scalar_lea.sflag [#allocation9], %s263_s15 }
  0x77   : > { %s1357_s20 = scalar_lea.vmem [#allocation8], %s560_s29 }
  0x78   : > { %953 = dma.done.wait (%p1245_p5), %s264_s22, 2048  }
  0x79   : > { %955 = vsyncadd (%p1245_p5), %s264_s22, 4294965248  ;;  %s275_s16 = sand.u32 1, %s970_s26  }
  0x7a   : > { %s1366_s30 = sshll.u32 %s275_s16, 4 }
  0x7b   : > { %s277_s4 = scalar_lea.vmem [#allocation10], %s1366_s30 }
  0x7c   : > { %957 = dma.done.wait (%p1313_p10), %s264_s22, 256  }
  0x7d   : > { %959 = vsyncadd (%p1313_p10), %s264_s22, 4294967040  ;;  %s1374_s24 = scalar_lea.vmem [#allocation11], %s1366_s30  ;;  %s1536_s8 = sld [smem:[#allocation22_spill]] }
  0x83   : > { %p563_p11 = scmp.ne.s32.totalorder %s1536_s8, 0 }
  0x85   : > { %322 = sbr.rel (%p563_p11) target bundleno = 141 (0x8d), region = 48 }
  0x8a   : > { %v1024_v0 = vmov 0.0  }
  0x8b   : > { %323 = vst [vmem:[%s1374_s24] sm:$0xff] %v1024_v0 }
  0x8c   : > { %324 = vst [vmem:[%s1374_s24 + $0x8] sm:$0xff] %v1024_v0 }
  0x8d PF: > { %s1537_s21 = sld [smem:[#allocation23_spill]] }
  0x8e   : > { %s1538_s19 = sld [smem:[#allocation22_spill]] }
  0x93   : > { %s325_s13 = sld [smem:[#allocation4 + %s1537_s21]] }
  0x99   : > { %p564_p7 = scmp.ge.s32.totalorder %s1538_s19, %s325_s13 }
  0x9a   : > { %s1539_s25 = sld [smem:[#allocation23_spill]] (!%p564_p7) }
  0x9b   : > { %329 = sbr.rel (%p564_p7) target bundleno = 322 (0x142), region = 52 }
  0xa0   : > { %v362_v1 = vld [vmem:[%s1357_s20 + $0x78] sm:$0xff]  ;;  %v361_v2 = vld [vmem:[%s1357_s20 + $0x70] sm:$0xff]  ;;  %v360_v3 = vld [vmem:[%s1357_s20 + $0x68] sm:$0xff]  ;;  %v331_v9 = vlaneseq  ;;  %s565_s9 = sshll.u32 %s1539_s25, 4  ;;  %v1025_v24 = vmov 1.0  }
  0xa1   : > { %363 = vmatpush.msra.mxu0 %v362_v1  ;;  %579 = vmatpush.msra.mxu1 %v362_v1  ;;  %v359_v4 = vld [vmem:[%s1357_s20 + $0x60] sm:$0xff]  ;;  %v358_v5 = vld [vmem:[%s1357_s20 + $0x58] sm:$0xff]  ;;  %v357_v6 = vld [vmem:[%s1357_s20 + $0x50] sm:$0xff]  ;;  %v334_v17 = vstv %s565_s9 }
  0xa2   : > { %v356_v7 = vld [vmem:[%s1357_s20 + $0x48] sm:$0xff]  ;;  %v355_v8 = vld [vmem:[%s1357_s20 + $0x40] sm:$0xff]  ;;  %v354_v10 = vld [vmem:[%s1357_s20 + $0x38] sm:$0xff]  ;;  %v332_v12 = vshrl.u32 %v331_v9, 7 }
  0xa3   : > { %364 = vmatpush.msra.mxu0 %v361_v2  ;;  %580 = vmatpush.msra.mxu1 %v361_v2  ;;  %v353_v11 = vld [vmem:[%s1357_s20 + $0x30] sm:$0xff]  ;;  %v352_v13 = vld [vmem:[%s1357_s20 + $0x28] sm:$0xff]  ;;  %v351_v14 = vld [vmem:[%s1357_s20 + $0x20] sm:$0xff] }
  0xa4   : > { %v333_v15 = vadd.s32 8, %v332_v12  ;;  %v350_v16 = vld [vmem:[%s1357_s20 + $0x18] sm:$0xff]  ;;  %v349_v18 = vld [vmem:[%s1357_s20 + $0x10] sm:$0xff]  ;;  %v335_v19 = vadd.s32 %v334_v17, %v332_v12  ;;  %v348_v22 = vld [vmem:[%s1357_s20 + $0x8] sm:$0xff] }
  0xa5   : > { %365 = vmatpush.msra.mxu0 %v360_v3  ;;  %581 = vmatpush.msra.mxu1 %v360_v3  ;;  %v747_v20 = vld [vmem:[%s1349_s18] ss:$0 sm:$0xff]  ;;  %v347_v23 = vld [vmem:[%s1357_s20] sm:$0xff] }
  0xa6   : > { %v336_v21 = vadd.s32 %v334_v17, %v333_v15  ;;  %vm339_vm0 = vcmp.eq.s32.totalorder %v335_v19, %v747_v20  ;;  %v345_v25 = vld [vmem:[%s1374_s24] sm:$0xff]  ;;  %v346_v26 = vld [vmem:[%s1374_s24 + $0x8] sm:$0xff] }
  0xa7   : > { %366 = vmatpush.msra.mxu0 %v359_v4  ;;  %582 = vmatpush.msra.mxu1 %v359_v4 }
  0xa8   : > { %vm340_vm1 = vcmp.eq.s32.totalorder %v336_v21, %v747_v20 }
  0xa9   : > { %367 = vmatpush.msra.mxu0 %v358_v5  ;;  %583 = vmatpush.msra.mxu1 %v358_v5 }
  0xab   : > { %368 = vmatpush.msra.mxu0 %v357_v6  ;;  %584 = vmatpush.msra.mxu1 %v357_v6 }
  0xad   : > { %369 = vmatpush.msra.mxu0 %v356_v7  ;;  %585 = vmatpush.msra.mxu1 %v356_v7 }
  0xaf   : > { %370 = vmatpush.msra.mxu0 %v355_v8  ;;  %586 = vmatpush.msra.mxu1 %v355_v8 }
  0xb1   : > { %371 = vmatpush.msra.mxu0 %v354_v10  ;;  %587 = vmatpush.msra.mxu1 %v354_v10 }
  0xb3   : > { %372 = vmatpush.msra.mxu0 %v353_v11  ;;  %588 = vmatpush.msra.mxu1 %v353_v11 }
  0xb5   : > { %373 = vmatpush.msra.mxu0 %v352_v13  ;;  %589 = vmatpush.msra.mxu1 %v352_v13 }
  0xb7   : > { %374 = vmatpush.msra.mxu0 %v351_v14  ;;  %590 = vmatpush.msra.mxu1 %v351_v14 }
  0xb9   : > { %375 = vmatpush.msra.mxu0 %v350_v16  ;;  %591 = vmatpush.msra.mxu1 %v350_v16 }
  0xbb   : > { %376 = vmatpush.msra.mxu0 %v349_v18  ;;  %592 = vmatpush.msra.mxu1 %v349_v18 }
  0xbd   : > { %377 = vmatpush.msra.mxu0 %v348_v22  ;;  %593 = vmatpush.msra.mxu1 %v348_v22 }
  0xbf   : > { %378 = vmatpush.msra.mxu0 %v347_v23  ;;  %594 = vmatpush.msra.mxu1 %v347_v23 }
  0xc0   : > { %568 = vmatmul.msk.f32.vlgmr.msra.gmra.mxu0 %vm339_vm0, %v1025_v24  ;;  %569 = vmatmul.msk.f32.vlgmr.msra.gmra.mxu1 %vm340_vm1, %v1025_v24 }
 0x13d   : > { %v380_v27 = vpop.f32.mrf.mxu0  ;;  %v383_v28 = vpop.f32.mrf.mxu1 }
 0x13e   : > { %v386_v29 = vadd.f32 %v380_v27, %v345_v25  ;;  %v387_v30 = vadd.f32 %v383_v28, %v346_v26 }
 0x140   : > { %388 = vst [vmem:[%s1374_s24] sm:$0xff] %v386_v29 }
 0x141   : > { %389 = vst [vmem:[%s1374_s24 + $0x8] sm:$0xff] %v387_v30 }
 0x142 PF: > { %s1540_s10 = sld [smem:[#allocation22_spill]] }
 0x148   : > { %p570_p5 = scmp.ne.s32.totalorder %s1540_s10, 1 }
 0x14a   : > { %393 = sbr.rel (%p570_p5) target bundleno = 343 (0x157), region = 56 }
 0x14f   : > { %v394_v31 = vld [vmem:[%s277_s4] sm:$0xff]  ;;  %v395_v33 = vld [vmem:[%s277_s4 + $0x8] sm:$0xff] }
 0x150   : > { %v396_v32 = vld [vmem:[%s1374_s24] sm:$0xff]  ;;  %v397_v35 = vld [vmem:[%s1374_s24 + $0x8] sm:$0xff] }
 0x151   : > { %v398_v34 = vmul.f32 %v396_v32, %v394_v31  ;;  %v399_v36 = vmul.f32 %v397_v35, %v395_v33 }
 0x153   : > { %v400_v37 = vadd.f32 %v398_v34, %v394_v31  ;;  %v401_v38 = vadd.f32 %v399_v36, %v395_v33 }
 0x155   : > { %402 = vst [vmem:[%s1374_s24] sm:$0xff] %v400_v37 }
 0x156   : > { %403 = vst [vmem:[%s1374_s24 + $0x8] sm:$0xff] %v401_v38 }
 0x157 PF: > { %s1541_s27 = sld [smem:[#allocation23_spill]]  ;;  %s417_s22 = sshll.u32 %s1374_s24, 4  ;;  %s418_s22 = int_to_ptr.vmem [resolvable:$true] %s417_s22 }
 0x158   : > { %s1542_s5 = sld [smem:[#allocation32_spill]]  ;;  %s405_s30 = scalar_lea.sflag [#allocation7], %s275_s16 }
 0x15d   : > { %s578_s17 = sshll.u32 %s1541_s27, 4 }
 0x15e   : > { %s416_s29 = scalar_lea.hbm %s1542_s5, %s578_s17  ;;  %s882_s19 = scalar_lea.hbm %s1542_s5, 48 }
 0x15f   : > { %s419_s20 = sshll.u32 %s416_s29, 4  ;;  %s420_s20 = int_to_ptr.hbm [resolvable:$true] %s419_s20 }
 0x160   : > { %s876_s4 = sshra.s32 %s420_s20, 4  ;;  %s877_s4 = int_to_ptr.hbm [resolvable:$true] %s876_s4 }
 0x161   : > { %s878_s8 = scalar_lea.hbm %s877_s4, 16  ;;  %p883_p12 = scmp.lt.s32.totalorder %s877_s4, %s1542_s5 }
 0x162   : > { %p879_p13 = scmp.ne.s32.totalorder %s877_s4, %s878_s8  ;;  %p884_p4 = scmp.lt.s32.totalorder %s882_s19, %s878_s8 }
 0x164   : > { %p880_p9 = pnand %p879_p13, %p1322_p2  ;;  %p885_p8 = por %p884_p4, %p883_p12 }
 0x166   : > { %p881_p10 = pneg %p880_p9 }
 0x168   : > { %p886_p1 = pnand %p885_p8, %p881_p10 }
 0x16a   : > { %889 = shalt.err (!%p886_p1)
}
 0x16b   : > { %s1026_s16 = smov 128   ;;  %s1027_s24 = smov 8  }
 0x16c   : > { %605 = dma.vmem_to_hbm [thread:$0]  (%p1322_p2), %s418_s22, 256, %s420_s20, %s405_s30, %s1026_s16, %s1026_s16, %s1027_s24  }
 0x16d PF: > { %p626_p6 = scmp.ge.s32.totalorder %s1018_s12, 2  ;;  %s434_s10 = sand.u32 1, %s966_s0  }
 0x16e   : > { %s435_s27 = scalar_lea.sflag [#allocation7], %s434_s10 }
 0x16f   : > { %p622_p0 = pnand %p626_p6, %p1331_p3 }
 0x171   : > { %p623_p11 = pneg %p622_p0 }
 0x173   : > { %961 = dma.done.wait (%p623_p11), %s435_s27, 256  }
 0x174   : > { %963 = vsyncadd (%p623_p11), %s435_s27, 4294967040  ;;  %s37_s12 = sadd.s32 1, %s1018_s12   ;;  %s1544_s3 = sld [smem:[#allocation21_spill]] }
 0x175   : > { %p1434_p7 = scmp.ge.s32.totalorder %s37_s12, 8   ;;  %s1545_s29 = sld [smem:[#allocation27_spill]] }
 0x176   : > { %s1546_s23 = sld [smem:[#allocation28_spill]]  ;;  %s1549_s0 = smov %s970_s26 }
 0x177   : > { %s1547_s8 = sld [smem:[#allocation24_spill]]  ;;  %s1550_s26 = smov %s974_s1 }
 0x178   : > { %s1548_s10 = sld [smem:[#allocation25_spill]]  ;;  %s1551_s1 = smov %s1297_s2 }
 0x179   : > { %s1552_s27 = smov %s982_s28  ;;  %s1554_s30 = smov %s994_s6 }
 0x17a   : > { %s1553_s28 = smov %s1544_s3  ;;  %s1555_s6 = smov %s998_s7 }
 0x17b   : > { %s1557_s9 = smov %s1014_s11  ;;  %s1558_s11 = smov %s1564_s14 }
 0x17c   : > { %s1556_s7 = smov %s1546_s23  ;;  %36 = sbr.rel (!%p1434_p7) target bundleno = 22 (0x16), region = 113 }
 0x181   :  { %441 = vsyncpa [#allocation6], 1 }
 0x182   :  { %443 = vsyncpa [#allocation6 + $0x1], 1 }
 0x183   :  { %444 = vsyncpa [#allocation9], 1 }
 0x184   :  { %446 = vsyncpa [#allocation9 + $0x1], 1 }
 0x185   :  { %447 = vsyncpa [#allocation7], 1 }
 0x186   :  { %449 = vsyncpa [#allocation7 + $0x1], 1 }

</bundles_post_ra>
